<compile_context>
chip_gen: v7x
topology: tpu7x:2x2x1
jax: 0.10.0
libtpu: 0.0.40
codegen_flags: <defaults>
</compile_context>

<pallas_src>
import functools

import jax
import jax.numpy as jnp
from jax.experimental import pallas as pl
from jax.experimental.pallas import tpu as pltpu


def _round_up(x, m):
    return (x + m - 1) // m * m


def deepfm_kernel(num_hidden, *refs):
    """One batch tile: FM second-order (MXU reduction) + MLP stack + add."""
    flat_ref, fmlin_ref, a_ref = refs[:3]
    n_wb = 2 * (num_hidden + 1)               # [w1,b1, ..., w_out, b_out]
    wb_refs = refs[3:3 + n_wb]
    out_ref = refs[3 + n_wb]

    flat = flat_ref[...]                      # (TN, C*E), compute dtype (bf16/f32)

    # ---- FM second-order interaction (field reduction on the MXU) ----
    # A is the static (C*E, E) block-identity in compute dtype (0/1, exact):
    #   flat @ A == sum over fields.  Accumulation is f32 on the MXU.
    a = a_ref[...]
    s = jnp.dot(flat, a, preferred_element_type=jnp.float32)            # (TN, E) f32
    flat_f32 = flat.astype(jnp.float32)
    sq_in = (flat_f32 * flat_f32).astype(flat.dtype)                    # square in f32, MXU in bf16
    sq = jnp.dot(sq_in, a, preferred_element_type=jnp.float32)          # (TN, E) f32
    second_order = 0.5 * jnp.sum(s * s - sq, axis=-1, keepdims=True)    # (TN, 1)

    fm_result = fmlin_ref[...] + second_order                           # (TN, OP) f32

    # ---- Deep (MLP) part ----
    # TODO(synk): nn.Dropout is identity in eval/inference mode; not applied here.
    h = flat
    for layer in range(num_hidden):
        w = wb_refs[2 * layer][...]
        b = wb_refs[2 * layer + 1][...]
        h = jnp.dot(h, w, preferred_element_type=jnp.float32) + b       # f32
        h = jnp.maximum(h, 0.0).astype(w.dtype)                         # back to compute dtype
    wo = wb_refs[2 * num_hidden][...]
    bo = wb_refs[2 * num_hidden + 1][...]
    deep = jnp.dot(h, wo, preferred_element_type=jnp.float32) + bo      # (TN, OP) f32

    out_ref[...] = (fm_result + deep).astype(out_ref.dtype)


def deepfm_forward(params, data, cat_dims, embed_dim, output_dim,
                   *, block_n=2048, compute_dtype=jnp.bfloat16):
    num_fields = len(cat_dims)
    flat_dim = num_fields * embed_dim
    op = _round_up(output_dim, 128)            # lane-dense (padded) output width

    # ---- glue: embedding lookup (data-dependent gather stays in plain JAX) ----
    idx = jnp.stack([data[f"field_{i}"] for i in range(num_fields)], axis=1)     # (N, C)
    offsets = jnp.concatenate(
        [jnp.zeros((1,), jnp.int32),
         jnp.cumsum(jnp.asarray(cat_dims[:-1], jnp.int32))]).astype(jnp.int32)
    flat_idx = idx + offsets[None, :]                                            # (N, C)

    # Cast the table once and gather directly in the compute dtype: the (N, C*E)
    # stream never exists in f32 in HBM.
    emb_table = params["embedding"].astype(compute_dtype)
    flat = emb_table[flat_idx].reshape(idx.shape[0], flat_dim)                   # (N, C*E) bf16/f32

    fm_linear = (jnp.sum(params["fm_linear"][flat_idx], axis=1)
                 + params["fm_bias"][None, :]).astype(jnp.float32)               # (N, O)
    fm_linear = jnp.pad(fm_linear, ((0, 0), (0, op - output_dim)))               # (N, OP) lane-dense

    # ---- weights: MLP in compute dtype, biases f32; output layer lane-padded ----
    wb_args = []
    layer = 1
    while f"w{layer}" in params:
        wb_args += [params[f"w{layer}"].astype(compute_dtype),
                    params[f"b{layer}"].astype(jnp.float32)]
        layer += 1
    num_hidden = layer - 1
    wo_p = jnp.pad(params["wo"], ((0, 0), (0, op - output_dim))).astype(compute_dtype)
    bo_p = jnp.pad(params["bo"], ((0, 0), (0, op - output_dim))).astype(jnp.float32)
    wb_args += [wo_p, bo_p]

    # Static block-identity for the in-kernel FM field reduction (compute dtype).
    a_mat = jnp.tile(jnp.eye(embed_dim, dtype=compute_dtype), (num_fields, 1))   # (C*E, E)

    # ---- batch tiling (tile multiple of 16; keep working set in a VMEM budget) ----
    n = flat.shape[0]
    dsize = jnp.dtype(compute_dtype).itemsize
    weight_bytes = (sum(int(w.size) * w.dtype.itemsize for w in wb_args)
                    + int(a_mat.size) * dsize)
    # Pipelined per-row bytes: flat (compute dtype) + fm_linear (f32) + out (f32).
    row_bytes = flat_dim * dsize + 2 * op * 4
    budget = 24 * 1024 * 1024                  # safe inside v7x's scoped VMEM
    max_tn = max(16, ((budget - weight_bytes) // (2 * row_bytes)) // 16 * 16)

    tn = min(_round_up(min(block_n, _round_up(n, 16)), 16), max_tn)
    n_pad = _round_up(n, tn)
    if n_pad != n:
        flat = jnp.pad(flat, ((0, n_pad - n), (0, 0)))
        fm_linear = jnp.pad(fm_linear, ((0, n_pad - n), (0, 0)))

    wb_specs = [pl.BlockSpec(w.shape, lambda i: (0, 0)) for w in wb_args]        # VMEM-resident
    grid = (n_pad // tn,)
    in_specs = ([pl.BlockSpec((tn, flat_dim), lambda i: (i, 0)),
                 pl.BlockSpec((tn, op), lambda i: (i, 0)),
                 pl.BlockSpec(a_mat.shape, lambda i: (0, 0))]
                + wb_specs)
    out_spec = pl.BlockSpec((tn, op), lambda i: (i, 0))

    kernel = functools.partial(deepfm_kernel, num_hidden)
    out = pl.pallas_call(
        kernel,
        out_shape=jax.ShapeDtypeStruct((n_pad, op), jnp.float32),
        grid_spec=pltpu.PrefetchScalarGridSpec(
            num_scalar_prefetch=0,
            grid=grid,
            in_specs=in_specs,
            out_specs=out_spec,
        ),
        compiler_params=pltpu.CompilerParams(
            dimension_semantics=("parallel",),        # shards across v7x's two TensorCores
            vmem_limit_bytes=32 * 1024 * 1024,        # safe on v5e/v6e/v7x
        ),
    )(flat, fm_linear, a_mat, *wb_args)
    # Padded batch rows / lanes are garbage by construction; slice them off here.
    return out[:n, :output_dim]


def deepfm_reference(params, data, cat_dims, embed_dim, output_dim):
    """Pure-JAX f32 reference for correctness checking."""
    num_fields = len(cat_dims)
    idx = jnp.stack([data[f"field_{i}"] for i in range(num_fields)], axis=1)
    offsets = jnp.concatenate(
        [jnp.zeros((1,), jnp.int32),
         jnp.cumsum(jnp.asarray(cat_dims[:-1], jnp.int32))]).astype(jnp.int32)
    flat_idx = idx + offsets[None, :]
    emb = params["embedding"][flat_idx]                                          # (N, C, E)
    lin = jnp.sum(params["fm_linear"][flat_idx], axis=1) + params["fm_bias"][None, :]
    s = jnp.sum(emb, axis=1)
    sq = jnp.sum(emb * emb, axis=1)
    fm = lin + 0.5 * jnp.sum(s * s - sq, axis=-1, keepdims=True)
    h = emb.reshape(emb.shape[0], -1)
    layer = 1
    while f"w{layer}" in params:
        h = jnp.maximum(h @ params[f"w{layer}"] + params[f"b{layer}"], 0.0)
        layer += 1
    deep = h @ params["wo"] + params["bo"]
    return fm + deep


if __name__ == "__main__":
    # Small, forward-consistent shapes.
    cat_dims = [10, 20, 30, 40]   # 4 categorical fields
    embed_dim = 8
    output_dim = 4
    mlp_dims = [32, 16]

    num_fields = len(cat_dims)
    total_cats = sum(cat_dims)
    mlp_in = num_fields * embed_dim

    key = jax.random.PRNGKey(0)
    keys = jax.random.split(key, 8)

    params = {
        "embedding": 0.1 * jax.random.normal(keys[0], (total_cats, embed_dim), jnp.float32),
        "fm_linear": 0.1 * jax.random.normal(keys[1], (total_cats, output_dim), jnp.float32),
        "fm_bias":   jnp.zeros((output_dim,), jnp.float32),
        "w1": 0.1 * jax.random.normal(keys[2], (mlp_in, mlp_dims[0]), jnp.float32),
        "b1": 0.01 * jax.random.normal(keys[3], (1, mlp_dims[0]), jnp.float32),
        "w2": 0.1 * jax.random.normal(keys[4], (mlp_dims[0], mlp_dims[1]), jnp.float32),
        "b2": 0.01 * jax.random.normal(keys[5], (1, mlp_dims[1]), jnp.float32),
        "wo": 0.1 * jax.random.normal(keys[6], (mlp_dims[1], output_dim), jnp.float32),
        "bo": jnp.zeros((1, output_dim), jnp.float32),
    }

    def make_data(batch, seed):
        ks = jax.random.split(jax.random.PRNGKey(seed), num_fields)
        return {f"field_{i}": jax.random.randint(ks[i], (batch,), 0, cat_dims[i], dtype=jnp.int32)
                for i in range(num_fields)}

    # 1) Small batch, f32 compute path (single tile) -> tight numerical check.
    data = make_data(8, 1)
    out = deepfm_forward(params, data, cat_dims, embed_dim, output_dim,
                         compute_dtype=jnp.float32)
    out = jax.block_until_ready(out)
    ref = deepfm_reference(params, data, cat_dims, embed_dim, output_dim)
    assert out.shape == (8, output_dim)
    assert jnp.allclose(out, ref, atol=1e-5, rtol=1e-5), "f32 Pallas kernel mismatch"

    # 2) Multi-tile grid + batch padding + bf16 perf path -> looser tolerance.
    data2 = make_data(300, 2)
    out2 = deepfm_forward(params, data2, cat_dims, embed_dim, output_dim,
                          block_n=128, compute_dtype=jnp.bfloat16)
    out2 = jax.block_until_ready(out2)
    ref2 = deepfm_reference(params, data2, cat_dims, embed_dim, output_dim)
    assert out2.shape == (300, output_dim)
    assert jnp.allclose(out2, ref2, atol=5e-2, rtol=5e-2), "bf16 Pallas kernel mismatch"

    # 3) Default (large-tile) bf16 path on a bigger batch to exercise the
    #    default block_n and VMEM-budgeted tile selection.
    data3 = make_data(1024, 3)
    out3 = deepfm_forward(params, data3, cat_dims, embed_dim, output_dim)
    out3 = jax.block_until_ready(out3)
    ref3 = deepfm_reference(params, data3, cat_dims, embed_dim, output_dim)
    assert out3.shape == (1024, output_dim)
    assert jnp.allclose(out3, ref3, atol=5e-2, rtol=5e-2), "default-path mismatch"

    print("KERNEL_OK")
</pallas_src>

<mosaic_0001>
module attributes {stable_mosaic.version = 11 : i64} {
  func.func @deepfm_kernel(%arg0: i32, %arg1: memref<16x32xf32, #tpu.memory_space<vmem>>, %arg2: memref<16x128xf32, #tpu.memory_space<vmem>>, %arg3: memref<32x8xf32, #tpu.memory_space<vmem>>, %arg4: memref<32x32xf32, #tpu.memory_space<vmem>>, %arg5: memref<1x32xf32, #tpu.memory_space<vmem>>, %arg6: memref<32x16xf32, #tpu.memory_space<vmem>>, %arg7: memref<1x16xf32, #tpu.memory_space<vmem>>, %arg8: memref<16x128xf32, #tpu.memory_space<vmem>>, %arg9: memref<1x128xf32, #tpu.memory_space<vmem>>, %arg10: memref<16x128xf32, #tpu.memory_space<vmem>>) attributes {dimension_semantics = [#tpu.dimension_semantics<parallel>], iteration_bounds = array<i64: 1>, scalar_prefetch = 0 : i64, scratch_operands = 0 : i64, tpu.core_type = #tpu.core_type<tc>, window_params = [{transform_indices = @transform_0, window_bounds = array<i64: 16, 32>}, {transform_indices = @transform_1, window_bounds = array<i64: 16, 128>}, {pipeline_mode = #tpu.pipeline_mode<synchronous>, transform_indices = @transform_2, window_bounds = array<i64: 32, 8>}, {pipeline_mode = #tpu.pipeline_mode<synchronous>, transform_indices = @transform_3, window_bounds = array<i64: 32, 32>}, {pipeline_mode = #tpu.pipeline_mode<synchronous>, transform_indices = @transform_4, window_bounds = array<i64: 1, 32>}, {pipeline_mode = #tpu.pipeline_mode<synchronous>, transform_indices = @transform_5, window_bounds = array<i64: 32, 16>}, {pipeline_mode = #tpu.pipeline_mode<synchronous>, transform_indices = @transform_6, window_bounds = array<i64: 1, 16>}, {pipeline_mode = #tpu.pipeline_mode<synchronous>, transform_indices = @transform_7, window_bounds = array<i64: 16, 128>}, {pipeline_mode = #tpu.pipeline_mode<synchronous>, transform_indices = @transform_8, window_bounds = array<i64: 1, 128>}, {transform_indices = @transform_9, window_bounds = array<i64: 16, 128>}]} {
    %c0 = arith.constant 0 : index
    %c0_0 = arith.constant 0 : index
    %0 = vector.load %arg1[%c0, %c0_0] : memref<16x32xf32, #tpu.memory_space<vmem>>, vector<16x32xf32>
    %c0_1 = arith.constant 0 : index
    %c0_2 = arith.constant 0 : index
    %1 = vector.load %arg3[%c0_1, %c0_2] : memref<32x8xf32, #tpu.memory_space<vmem>>, vector<32x8xf32>
    %cst = arith.constant dense<0.000000e+00> : vector<16x8xf32>
    %2 = tpu.matmul %0, %1, %cst {dimension_numbers = #tpu.dot_dimension_numbers<[1], [0], [0], [1], [0, 0, 1, 1], [], []>} : vector<16x32xf32>, vector<32x8xf32>, vector<16x8xf32> -> vector<16x8xf32>
    %3 = arith.mulf %0, %0 : vector<16x32xf32>
    %cst_3 = arith.constant dense<0.000000e+00> : vector<16x8xf32>
    %4 = tpu.matmul %3, %1, %cst_3 {dimension_numbers = #tpu.dot_dimension_numbers<[1], [0], [0], [1], [0, 0, 1, 1], [], []>} : vector<16x32xf32>, vector<32x8xf32>, vector<16x8xf32> -> vector<16x8xf32>
    %5 = arith.mulf %2, %2 : vector<16x8xf32>
    %6 = arith.subf %5, %4 : vector<16x8xf32>
    %cst_4 = arith.constant dense<0.000000e+00> : vector<16xf32>
    %7 = vector.multi_reduction <add>, %6, %cst_4 [1] : vector<16x8xf32> to vector<16xf32>
    %8 = vector.shape_cast %7 : vector<16xf32> to vector<16x1xf32>
    %cst_5 = arith.constant 5.000000e-01 : f32
    %9 = vector.broadcast %cst_5 : f32 to vector<16x1xf32>
    %10 = arith.mulf %9, %8 : vector<16x1xf32>
    %c0_6 = arith.constant 0 : index
    %c0_7 = arith.constant 0 : index
    %11 = vector.load %arg2[%c0_6, %c0_7] : memref<16x128xf32, #tpu.memory_space<vmem>>, vector<16x128xf32>
    %12 = vector.broadcast %10 : vector<16x1xf32> to vector<16x128xf32>
    %13 = arith.addf %11, %12 : vector<16x128xf32>
    %c0_8 = arith.constant 0 : index
    %c0_9 = arith.constant 0 : index
    %14 = vector.load %arg4[%c0_8, %c0_9] : memref<32x32xf32, #tpu.memory_space<vmem>>, vector<32x32xf32>
    %c0_10 = arith.constant 0 : index
    %c0_11 = arith.constant 0 : index
    %15 = vector.load %arg5[%c0_10, %c0_11] : memref<1x32xf32, #tpu.memory_space<vmem>>, vector<1x32xf32>
    %cst_12 = arith.constant dense<0.000000e+00> : vector<16x32xf32>
    %16 = tpu.matmul %0, %14, %cst_12 {dimension_numbers = #tpu.dot_dimension_numbers<[1], [0], [0], [1], [0, 0, 1, 1], [], []>} : vector<16x32xf32>, vector<32x32xf32>, vector<16x32xf32> -> vector<16x32xf32>
    %17 = vector.broadcast %15 : vector<1x32xf32> to vector<16x32xf32>
    %18 = arith.addf %16, %17 : vector<16x32xf32>
    %cst_13 = arith.constant 0.000000e+00 : f32
    %19 = vector.broadcast %cst_13 : f32 to vector<16x32xf32>
    %20 = arith.maximumf %18, %19 : vector<16x32xf32>
    %c0_14 = arith.constant 0 : index
    %c0_15 = arith.constant 0 : index
    %21 = vector.load %arg6[%c0_14, %c0_15] : memref<32x16xf32, #tpu.memory_space<vmem>>, vector<32x16xf32>
    %c0_16 = arith.constant 0 : index
    %c0_17 = arith.constant 0 : index
    %22 = vector.load %arg7[%c0_16, %c0_17] : memref<1x16xf32, #tpu.memory_space<vmem>>, vector<1x16xf32>
    %cst_18 = arith.constant dense<0.000000e+00> : vector<16x16xf32>
    %23 = tpu.matmul %20, %21, %cst_18 {dimension_numbers = #tpu.dot_dimension_numbers<[1], [0], [0], [1], [0, 0, 1, 1], [], []>} : vector<16x32xf32>, vector<32x16xf32>, vector<16x16xf32> -> vector<16x16xf32>
    %24 = vector.broadcast %22 : vector<1x16xf32> to vector<16x16xf32>
    %25 = arith.addf %23, %24 : vector<16x16xf32>
    %cst_19 = arith.constant 0.000000e+00 : f32
    %26 = vector.broadcast %cst_19 : f32 to vector<16x16xf32>
    %27 = arith.maximumf %25, %26 : vector<16x16xf32>
    %c0_20 = arith.constant 0 : index
    %c0_21 = arith.constant 0 : index
    %28 = vector.load %arg8[%c0_20, %c0_21] : memref<16x128xf32, #tpu.memory_space<vmem>>, vector<16x128xf32>
    %c0_22 = arith.constant 0 : index
    %c0_23 = arith.constant 0 : index
    %29 = vector.load %arg9[%c0_22, %c0_23] : memref<1x128xf32, #tpu.memory_space<vmem>>, vector<1x128xf32>
    %cst_24 = arith.constant dense<0.000000e+00> : vector<16x128xf32>
    %30 = tpu.matmul %27, %28, %cst_24 {dimension_numbers = #tpu.dot_dimension_numbers<[1], [0], [0], [1], [0, 0, 1, 1], [], []>} : vector<16x16xf32>, vector<16x128xf32>, vector<16x128xf32> -> vector<16x128xf32>
    %31 = vector.broadcast %29 : vector<1x128xf32> to vector<16x128xf32>
    %32 = arith.addf %30, %31 : vector<16x128xf32>
    %33 = arith.addf %13, %32 : vector<16x128xf32>
    %c0_25 = arith.constant 0 : index
    %c0_26 = arith.constant 0 : index
    %34 = vector.load %arg10[%c0_25, %c0_26] : memref<16x128xf32, #tpu.memory_space<vmem>>, vector<16x128xf32>
    tpu.vector_store %arg10[%c0_25, %c0_26], %33 {strides = array<i32>} : memref<16x128xf32, #tpu.memory_space<vmem>>, vector<16x128xf32>,
    return
  }
  func.func @transform_0(%arg0: i32) -> (i32, i32) {
    %c0_i32 = arith.constant 0 : i32
    %c0_i32_0 = arith.constant 0 : i32
    return %arg0, %c0_i32 : i32, i32
  }
  func.func @transform_1(%arg0: i32) -> (i32, i32) {
    %c0_i32 = arith.constant 0 : i32
    %c0_i32_0 = arith.constant 0 : i32
    return %arg0, %c0_i32 : i32, i32
  }
  func.func @transform_2(%arg0: i32) -> (i32, i32) {
    %c0_i32 = arith.constant 0 : i32
    %c0_i32_0 = arith.constant 0 : i32
    %c0_i32_1 = arith.constant 0 : i32
    return %c0_i32, %c0_i32_0 : i32, i32
  }
  func.func @transform_3(%arg0: i32) -> (i32, i32) {
    %c0_i32 = arith.constant 0 : i32
    %c0_i32_0 = arith.constant 0 : i32
    %c0_i32_1 = arith.constant 0 : i32
    return %c0_i32, %c0_i32_0 : i32, i32
  }
  func.func @transform_4(%arg0: i32) -> (i32, i32) {
    %c0_i32 = arith.constant 0 : i32
    %c0_i32_0 = arith.constant 0 : i32
    %c0_i32_1 = arith.constant 0 : i32
    return %c0_i32, %c0_i32_0 : i32, i32
  }
  func.func @transform_5(%arg0: i32) -> (i32, i32) {
    %c0_i32 = arith.constant 0 : i32
    %c0_i32_0 = arith.constant 0 : i32
    %c0_i32_1 = arith.constant 0 : i32
    return %c0_i32, %c0_i32_0 : i32, i32
  }
  func.func @transform_6(%arg0: i32) -> (i32, i32) {
    %c0_i32 = arith.constant 0 : i32
    %c0_i32_0 = arith.constant 0 : i32
    %c0_i32_1 = arith.constant 0 : i32
    return %c0_i32, %c0_i32_0 : i32, i32
  }
  func.func @transform_7(%arg0: i32) -> (i32, i32) {
    %c0_i32 = arith.constant 0 : i32
    %c0_i32_0 = arith.constant 0 : i32
    %c0_i32_1 = arith.constant 0 : i32
    return %c0_i32, %c0_i32_0 : i32, i32
  }
  func.func @transform_8(%arg0: i32) -> (i32, i32) {
    %c0_i32 = arith.constant 0 : i32
    %c0_i32_0 = arith.constant 0 : i32
    %c0_i32_1 = arith.constant 0 : i32
    return %c0_i32, %c0_i32_0 : i32, i32
  }
  func.func @transform_9(%arg0: i32) -> (i32, i32) {
    %c0_i32 = arith.constant 0 : i32
    %c0_i32_0 = arith.constant 0 : i32
    return %arg0, %c0_i32 : i32, i32
  }
}

</mosaic_0001>

<bundles_post_ra>
// kernel: tpu_custom_call.1
= control target key start
LH: loop header
LB: loop body
LE: loop exit
PB: predicated region body
PF: predicated region fallthrough
CT: control target
= control target key end

     0   :  { %vm39_vm0 = vcmask 261120   ;;  %s805_s0 = inlined_call_operand.vmem [shape: f32[16,32], index: 0, kind: input, shape index: {}]   ;;  %s806_s1 = inlined_call_operand.vmem [shape: f32[16,128], index: 1, kind: input, shape index: {}]   ;;  %s807_s2 = inlined_call_operand.vmem [shape: f32[32,8], index: 2, kind: input, shape index: {}]   ;;  %s808_s3 = inlined_call_operand.vmem [shape: f32[32,32], index: 3, kind: input, shape index: {}]   ;;  %s809_s4 = inlined_call_operand.vmem [shape: f32[1,32], index: 4, kind: input, shape index: {}]   ;;  %s810_s5 = inlined_call_operand.vmem [shape: f32[32,16], index: 5, kind: input, shape index: {}]   ;;  %s811_s6 = inlined_call_operand.vmem [shape: f32[1,16], index: 6, kind: input, shape index: {}]   ;;  %s812_s7 = inlined_call_operand.vmem [shape: f32[16,128], index: 7, kind: input, shape index: {}]   ;;  %s813_s8 = inlined_call_operand.vmem [shape: f32[1,128], index: 8, kind: input, shape index: {}]   ;;  %s814_s9 = inlined_call_operand.hbm [shape: f32[16,128], index: 9, kind: output, shape index: {}]  }
   0x1   :  { %v35_v0 = vld [vmem:[%s807_s2] sm:$0xff]  ;;  %v36_v1 = vld [vmem:[%s807_s2 + $0x8] sm:$0xff]  ;;  %v37_v2 = vld [vmem:[%s807_s2 + $0x10] sm:$0xff] }
   0x2   :  { %v606_v3 = vpack.c.bf16 %v36_v1, %v35_v0  ;;  %v38_v4 = vld [vmem:[%s807_s2 + $0x18] sm:$0xff]  ;;  %v33_v5 = vld [vmem:[%s805_s0] sm:$0xff]  ;;  %v222_v8 = vld [vmem:[%s808_s3 + $0x8] sm:$0xff] }
   0x3   :  { %v610_v6 = vpack.c.bf16 %v38_v4, %v37_v2  ;;  %563 = vmatprep.mubr.msk.f32.mxu0 %vm39_vm0, %v33_v5  ;;  %v221_v7 = vld [vmem:[%s808_s3] sm:$0xff]  ;;  %v121_v9 = vmul.f32 %v33_v5, %v33_v5 }
   0x4   :  { %607 = vmatprep.subr.bf16.mxu0 %v606_v3  ;;  %615 = vmatprep.subr.bf16.mxu1 %v606_v3 }
   0x5   :  { %14 = vsyncpa [#allocation3], 0  ;;  %609 = vmatpush3.bf16.msra.mxu0 %v606_v3  ;;  %617 = vmatpush3.bf16.msra.mxu1 %v606_v3  ;;  %v34_v10 = vld [vmem:[%s805_s0 + $0x8] sm:$0xff]  ;;  %v622_v11 = vpack.c.bf16 %v222_v8, %v221_v7  ;;  %v223_v12 = vld [vmem:[%s808_s3 + $0x10] sm:$0xff]  ;;  %vm208_vm1 = vcmask 64512   ;;  %vm412_vm2 = vcmask 130048  }
   0x6   :  { %611 = vmatprep.subr.bf16.mxu0 %v610_v6  ;;  %619 = vmatprep.subr.bf16.mxu1 %v610_v6  ;;  %v224_v13 = vld [vmem:[%s808_s3 + $0x18] sm:$0xff]  ;;  %v122_v14 = vmul.f32 %v34_v10, %v34_v10  ;;  %v309_v16 = vld [vmem:[%s810_s5] sm:$0xff]  ;;  %v310_v17 = vld [vmem:[%s810_s5 + $0x8] sm:$0xff]  ;;  %s669_s2 = smov [#allocation2]  }
   0x7   :  { %574 = vmatprep.mubr.msk.f32.mxu1 %vm39_vm0, %v121_v9  ;;  %v626_v15 = vpack.c.bf16 %v224_v13, %v223_v12  ;;  %v630_v18 = vpack.c.bf16 %v310_v17, %v309_v16  ;;  %v311_v19 = vld [vmem:[%s810_s5 + $0x10] sm:$0xff]  ;;  %v312_v20 = vld [vmem:[%s810_s5 + $0x18] sm:$0xff]  ;;  %v518_v31 = vld [vmem:[%s809_s4] ss:$0 sm:$0xff]  ;;  %s503_s23 = sshll.u32 %s669_s2, 4  ;;  %s504_s23 = int_to_ptr.vmem [resolvable:$true] %s503_s23 }
   0x8   :  { %v634_v21 = vpack.c.bf16 %v312_v20, %v311_v19  ;;  %v403_v39 = vld [vmem:[%s812_s7] sm:$0xff]  ;;  %v404_v40 = vld [vmem:[%s812_s7 + $0x8] sm:$0xff]  ;;  %s645_s24 = scalar_lea.vmem %s504_s23, 256  ;;  %p650_p1 = scmp.lt.s32.totalorder %s504_s23, %s504_s23 }
   0x9   :  { %613 = vmatpush3.bf16.msra.mxu0 %v610_v6  ;;  %621 = vmatpush3.bf16.msra.mxu1 %v610_v6  ;;  %v638_v41 = vpack.c.bf16 %v404_v40, %v403_v39  ;;  %v521_v42 = vld [vmem:[%s811_s6] ss:$0 sm:$0xff]  ;;  %v218_v53 = vld [vmem:[%s806_s1 + $0x8] sm:$0xff]  ;;  %p646_p0 = scmp.ne.s32.totalorder %s504_s23, %s645_s24  ;;  %p651_p2 = scmp.lt.s32.totalorder %s645_s24, %s645_s24 }
   0xa   :  { %623 = vmatprep.subr.bf16.mxu0 %v622_v11  ;;  %631 = vmatprep.subr.bf16.mxu1 %v630_v18  ;;  %v524_v54 = vld [vmem:[%s813_s8] ss:$0 sm:$0xff] }
   0xb   :  { %v217_v55 = vld [vmem:[%s806_s1] sm:$0xff]  ;;  %p652_p3 = por %p651_p2, %p650_p1 }
   0xc   :  { %564 = vmatmul.mubr.msk.f32.vlgmr.msra.gmra.mrb[0].mxu0 %vm39_vm0, %v34_v10  ;;  %575 = vmatmul.mubr.msk.f32.vlgmr.msra.gmra.mrb[0].mxu1 %vm39_vm0, %v122_v14 }
   0xd   :  { %625 = vmatpush3.bf16.msra.mxu0 %v622_v11  ;;  %585 = vmatprep.mubr.msk.f32.mxu0 %vm39_vm0, %v33_v5  ;;  %p653_p4 = pnand %p652_p3, %p646_p0 }
   0xe   :  { %627 = vmatprep.subr.bf16.mxu0 %v626_v15  ;;  %633 = vmatpush3.bf16.msra.mxu1 %v630_v18 }
   0xf   :  { %635 = vmatprep.subr.bf16.mxu1 %v634_v21 }
  0x11   :  { %629 = vmatpush3.bf16.msra.mxu0 %v626_v15 }
  0x12   :  { %637 = vmatpush3.bf16.msra.mxu1 %v634_v21  ;;  %639 = vmatprep.subr.bf16.mxu0 %v638_v41 }
  0x14   :  { %586 = vmatmul.mubr.msk.f32.vlgmr.msra.gmra.mrb[2].mxu0 %vm39_vm0, %v34_v10 }
  0x15   :  { %641 = vmatpush3.bf16.msra.mxu0 %v638_v41 }
  0xdf   :  { %v565_v22 = vpop.f32.mrb[0].mxu0  ;;  %v576_v23 = vpop.f32.mrb[0].mxu1 }
  0xe0   :  { %v205_v24 = vmul.f32 %v565_v22, %v565_v22  ;;  %v112_v25 = vpop.f32.mrb[1].mxu0  ;;  %v195_v26 = vpop.f32.mrb[1].mxu1 }
  0xe1   :  { %v204_v27 = vmul.f32 %v112_v25, %v112_v25 }
  0xe2   :  { %v207_v28 = vsub.f32 %v205_v24, %v576_v23 }
  0xe3   :  { %v206_v29 = vsub.f32 %v204_v27, %v195_v26 }
  0xe4   :  { %v212_v36 = vsel %vm208_vm1, %v207_v28, 0.0 }
  0xe5   :  { %v209_v30 = vsel %vm208_vm1, %v206_v29, 0.0 }
  0xe6   :  { %210 = vadd.xlane.f32.xlu0 %v209_v30 }
  0xe7   :  { %v587_v32 = vpop.f32.mrb[2].mxu0 }
  0xe8   :  { %v304_v33 = vadd.f32 %v587_v32, %v518_v31  ;;  %v298_v34 = vpop.f32.mrb[3].mxu0 }
  0xe9   :  { %v299_v35 = vadd.f32 %v518_v31, %v298_v34 }
  0xea   :  { %213 = vadd.xlane.f32.xlu0 %v212_v36  ;;  %v308_v38 = vmax.f32 %v304_v33, 0.0 }
  0xeb   :  { %v307_v37 = vmax.f32 %v299_v35, 0.0 }
  0xed   :  { %596 = vmatprep.mubr.msk.f32.mxu1 %vm39_vm0, %v307_v37 }
  0xee   :  { %597 = vmatmul.mubr.msk.f32.vlgmr.msra.gmra.mrb[2].mxu1 %vm39_vm0, %v308_v38 }
 0x173   :  { %v211_v49 = vpop.xlane.xlu0 %210 }
 0x174   :  { %v215_v52 = vmul.f32 0.5, %v211_v49 }
 0x176   :  { %v219_v60 = vadd.f32 %v217_v55, %v215_v52 }
 0x177   :  { %v214_v50 = vpop.xlane.xlu0 %213 }
 0x178   :  { %v216_v51 = vmul.f32 0.5, %v214_v50 }
 0x17a   :  { %v220_v57 = vadd.f32 %v218_v53, %v216_v51 }
 0x1c1   :  { %v598_v43 = vpop.f32.mrb[2].mxu1 }
 0x1c2   :  { %v398_v44 = vadd.f32 %v598_v43, %v521_v42  ;;  %v392_v45 = vpop.f32.mrb[3].mxu1 }
 0x1c3   :  { %v393_v46 = vadd.f32 %v521_v42, %v392_v45 }
 0x1c4   :  { %v402_v48 = vmax.f32 %v398_v44, 0.0 }
 0x1c5   :  { %v401_v47 = vmax.f32 %v393_v46, 0.0 }
 0x1c7   :  { %603 = vmatprep.mubr.msk.f32.mxu0 %vm412_vm2, %v401_v47 }
 0x1c8   :  { %604 = vmatmul.mubr.msk.f32.vlgmr.msra.gmra.mrb[4].mxu0 %vm412_vm2, %v402_v48 }
 0x29b   :  { %v605_v56 = vpop.f32.mrb[4].mxu0 }
 0x29c   :  { %v491_v58 = vadd.f32 %v605_v56, %v524_v54  ;;  %v485_v59 = vpop.f32.mrb[5].mxu0 }
 0x29d   :  { %v486_v61 = vadd.f32 %v524_v54, %v485_v59 }
 0x29e   :  { %v495_v62 = vadd.f32 %v491_v58, %v220_v57 }
 0x29f   :  { %v494_v63 = vadd.f32 %v486_v61, %v219_v60 }
 0x2a0   :  { %497 = vst [vmem:[#allocation2 + $0x8] sm:$0xff] %v495_v62 }
 0x2a1   :  { %496 = vst [vmem:[#allocation2] sm:$0xff] %v494_v63 }
 0x2a2   :  { %656 = shalt.err (!%p653_p4)
}
 0x2a3   :  { %s657_s25 = scalar_lea.hbm %s814_s9, 256 }
 0x2a4   :  { %p658_p5 = scmp.ne.s32.totalorder %s814_s9, %s657_s25  ;;  %p661_p6 = scmp.lt.u32.totalorder %s657_s25, %s814_s9 }
 0x2a6   :  { %p663_p7 = pnand %p661_p6, %p658_p5 }
 0x2a8   :  { %666 = shalt.err (!%p663_p7)
}
 0x2a9   :  { %s670_s3 = smov 128   ;;  %s671_s29 = smov 8  }
 0x2aa   :  { %509 = dma.vmem_to_hbm [thread:$0]  %s504_s23, 256, %s814_s9, [#allocation3], %s670_s3, %s670_s3, %s671_s29  }
 0x2ab   :  { %667 = dma.done.wait [#allocation3], 256  }
 0x2ac   :  { %668 = vsyncadd [#allocation3], 4294967040 }
 0x2ad   :  { %513 = vsyncpa [#allocation3], 1 }

</bundles_post_ra>
